<compile_context>
chip_gen: v7x
topology: tpu7x:2x2x1
jax: 0.10.0
libtpu: 0.0.40
codegen_flags: <defaults>
</compile_context>

<pallas_src>
import jax
import jax.numpy as jnp
from jax import lax
from jax.experimental import pallas as pl
from jax.experimental.pallas import tpu as pltpu
import numpy as np

EPS = 1e-5
MOMENTUM = 0.1
_VMEM_LIMIT = 32 * 1024 * 1024          # safe on v5e/v6e/v7x
_TILE_BUDGET = 2 * 1024 * 1024          # bytes per (single) input tile


# --------------------------- tile-size helpers ---------------------------

def _pick_tile_hw(hw):
    """Largest lane-dense tile that evenly divides H*W."""
    for cand in (2048, 1024, 512, 256, 128):
        if hw % cand == 0:
            return cand
    return hw  # block equals full dim (allowed by the (8,128) rule)


def _pick_tile_lead(n, c, thw, itemsize, budget=_TILE_BUDGET):
    """Largest divisor of N such that one (tn, C, thw) tile fits the budget."""
    best = 1
    for t in range(1, n + 1):
        if n % t == 0 and t * c * thw * itemsize <= budget:
            best = t
    return best


def _pick_tile_rows(n, c, itemsize, budget=_TILE_BUDGET):
    """Largest multiple-of-8 divisor of N (2D case) fitting the budget."""
    best = None
    t = 8
    while t <= n:
        if n % t == 0 and t * c * itemsize <= budget:
            best = t
        t += 8
    return best if best is not None else n


# ------------------------------ 4D kernels --------------------------------
# x viewed as (N, C, H*W); blocks are (tn, C, thw).

def _stats_kernel_3d(x_ref, sum_ref, sumsq_ref):
    @pl.when((pl.program_id(0) == 0) & (pl.program_id(1) == 0))
    def _():
        sum_ref[...] = jnp.zeros_like(sum_ref)
        sumsq_ref[...] = jnp.zeros_like(sumsq_ref)

    x = x_ref[...].astype(jnp.float32)                       # (tn, C, thw)
    ps = jnp.sum(x, axis=2, keepdims=True)                   # (tn, C, 1)
    pss = jnp.sum(x * x, axis=2, keepdims=True)              # (tn, C, 1)
    sum_ref[...] += jnp.sum(ps, axis=0, keepdims=True)       # (1, C, 1)
    sumsq_ref[...] += jnp.sum(pss, axis=0, keepdims=True)    # (1, C, 1)


def _norm_kernel_3d(x_ref, scale_ref, shift_ref, y_ref):
    x = x_ref[...].astype(jnp.float32)                       # (tn, C, thw)
    y_ref[...] = (x * scale_ref[...] + shift_ref[...]).astype(y_ref.dtype)


# ------------------------------ 2D kernels --------------------------------
# x is (N, C): channels already on the lane axis, reduce over rows.

def _stats_kernel_2d(x_ref, sum_ref, sumsq_ref):
    @pl.when(pl.program_id(0) == 0)
    def _():
        sum_ref[...] = jnp.zeros_like(sum_ref)
        sumsq_ref[...] = jnp.zeros_like(sumsq_ref)

    x = x_ref[...].astype(jnp.float32)                       # (tm, C)
    sum_ref[...] += jnp.sum(x, axis=0, keepdims=True)
    sumsq_ref[...] += jnp.sum(x * x, axis=0, keepdims=True)


def _norm_kernel_2d(x_ref, scale_ref, shift_ref, y_ref):
    x = x_ref[...].astype(jnp.float32)                       # (tm, C)
    y_ref[...] = (x * scale_ref[...] + shift_ref[...]).astype(y_ref.dtype)


# -------------------------------- wrapper ---------------------------------

def batch_norm_pallas(x, gamma, beta, moving_mean, moving_var,
                      eps=EPS, momentum=MOMENTUM):
    """Training-mode batch norm. x is NCHW (4D) or NC (2D), like the module."""
    # TODO(synk): the torch.is_grad_enabled()==False (inference) branch is not
    # implemented; this kernel covers the training-mode forward only.
    if x.ndim == 4:
        n, c, h, w = x.shape
        hw = h * w
        x3 = x.reshape(n, c, hw)                 # free reshape, no transpose
        thw = _pick_tile_hw(hw)
        tn = _pick_tile_lead(n, c, thw, x.dtype.itemsize)
        grid = (n // tn, hw // thw)
        count = n * hw

        sums, sumsqs = pl.pallas_call(
            _stats_kernel_3d,
            grid=grid,
            in_specs=[pl.BlockSpec((tn, c, thw), lambda i, j: (i, 0, j))],
            out_specs=(pl.BlockSpec((1, c, 1), lambda i, j: (0, 0, 0)),
                       pl.BlockSpec((1, c, 1), lambda i, j: (0, 0, 0))),
            out_shape=(jax.ShapeDtypeStruct((1, c, 1), jnp.float32),
                       jax.ShapeDtypeStruct((1, c, 1), jnp.float32)),
            compiler_params=pltpu.CompilerParams(
                dimension_semantics=("arbitrary", "arbitrary"),
                vmem_limit_bytes=_VMEM_LIMIT),
        )(x3)

        inv_count = 1.0 / float(count)
        mean = sums * inv_count                                   # (1, C, 1)
        # Biased variance (matches the reference module; nn.BatchNorm2d would
        # use the unbiased estimator for the running var).
        var = jnp.maximum(sumsqs * inv_count - mean * mean, 0.0)  # (1, C, 1)
        inv_std = lax.rsqrt(var + eps)
        g = gamma.reshape(1, c, 1).astype(jnp.float32)
        b = beta.reshape(1, c, 1).astype(jnp.float32)
        scale = g * inv_std
        shift = b - mean * scale

        y3 = pl.pallas_call(
            _norm_kernel_3d,
            grid=grid,
            in_specs=[pl.BlockSpec((tn, c, thw), lambda i, j: (i, 0, j)),
                      pl.BlockSpec((1, c, 1), lambda i, j: (0, 0, 0)),
                      pl.BlockSpec((1, c, 1), lambda i, j: (0, 0, 0))],
            out_specs=pl.BlockSpec((tn, c, thw), lambda i, j: (i, 0, j)),
            out_shape=jax.ShapeDtypeStruct((n, c, hw), x.dtype),
            compiler_params=pltpu.CompilerParams(
                dimension_semantics=("parallel", "parallel"),
                vmem_limit_bytes=_VMEM_LIMIT),
        )(x3, scale, shift)

        y = y3.reshape(n, c, h, w)
        mean_out = mean.reshape(moving_mean.shape)
        var_out = var.reshape(moving_var.shape)

    elif x.ndim == 2:
        n, c = x.shape
        tm = _pick_tile_rows(n, c, x.dtype.itemsize)
        grid = (n // tm,)
        count = n

        sums, sumsqs = pl.pallas_call(
            _stats_kernel_2d,
            grid=grid,
            in_specs=[pl.BlockSpec((tm, c), lambda i: (i, 0))],
            out_specs=(pl.BlockSpec((1, c), lambda i: (0, 0)),
                       pl.BlockSpec((1, c), lambda i: (0, 0))),
            out_shape=(jax.ShapeDtypeStruct((1, c), jnp.float32),
                       jax.ShapeDtypeStruct((1, c), jnp.float32)),
            compiler_params=pltpu.CompilerParams(
                dimension_semantics=("arbitrary",),
                vmem_limit_bytes=_VMEM_LIMIT),
        )(x)

        inv_count = 1.0 / float(count)
        mean = sums * inv_count                                   # (1, C)
        var = jnp.maximum(sumsqs * inv_count - mean * mean, 0.0)  # (1, C)
        inv_std = lax.rsqrt(var + eps)
        g = gamma.reshape(1, c).astype(jnp.float32)
        b = beta.reshape(1, c).astype(jnp.float32)
        scale = g * inv_std
        shift = b - mean * scale

        y = pl.pallas_call(
            _norm_kernel_2d,
            grid=grid,
            in_specs=[pl.BlockSpec((tm, c), lambda i: (i, 0)),
                      pl.BlockSpec((1, c), lambda i: (0, 0)),
                      pl.BlockSpec((1, c), lambda i: (0, 0))],
            out_specs=pl.BlockSpec((tm, c), lambda i: (i, 0)),
            out_shape=jax.ShapeDtypeStruct((n, c), x.dtype),
            compiler_params=pltpu.CompilerParams(
                dimension_semantics=("parallel",),
                vmem_limit_bytes=_VMEM_LIMIT),
        )(x, scale, shift)

        mean_out = mean.reshape(moving_mean.shape)
        var_out = var.reshape(moving_var.shape)
    else:
        raise ValueError("X must be 2D or 4D")

    # EMA update of the moving statistics (tiny (1, C) op, done in the wrapper
    # so the kernels never touch lane-sparse per-channel HBM buffers).
    new_mm = (1.0 - momentum) * moving_mean.astype(jnp.float32) + momentum * mean_out
    new_mv = (1.0 - momentum) * moving_var.astype(jnp.float32) + momentum * var_out
    return y, new_mm, new_mv


# ------------------------------- reference --------------------------------

def _reference(x, gamma, beta, moving_mean, moving_var,
               eps=EPS, momentum=MOMENTUM):
    """Pure-JAX reference mirroring the PyTorch training branch."""
    if x.ndim == 4:
        mean = jnp.mean(x, axis=(0, 2, 3), keepdims=True)
        var = jnp.mean((x - mean) ** 2, axis=(0, 2, 3), keepdims=True)
    else:
        mean = jnp.mean(x, axis=0)
        var = jnp.mean((x - mean) ** 2, axis=0)
    x_hat = (x - mean) / jnp.sqrt(var + eps)
    y = gamma * x_hat + beta
    new_mm = (1.0 - momentum) * moving_mean + momentum * mean
    new_mv = (1.0 - momentum) * moving_var + momentum * var
    return y, new_mm, new_mv


# --------------------------------- main ------------------------------------

if __name__ == "__main__":
    key = jax.random.PRNGKey(0)
    k4, k2 = jax.random.split(key)

    # ---- 4D (NCHW) case: matches BatchNorm(num_features=4, num_dims=4) ----
    N, C, H, W = 2, 4, 16, 16
    x = jax.random.normal(k4, (N, C, H, W), dtype=jnp.float32) * 2.0 + 0.5
    gamma = jnp.ones((1, C, 1, 1), dtype=jnp.float32)
    beta = jnp.zeros((1, C, 1, 1), dtype=jnp.float32)
    moving_mean = jnp.zeros((1, C, 1, 1), dtype=jnp.float32)
    moving_var = jnp.ones((1, C, 1, 1), dtype=jnp.float32)

    y, new_mm, new_mv = batch_norm_pallas(x, gamma, beta, moving_mean, moving_var)
    jax.block_until_ready((y, new_mm, new_mv))

    y_ref, mm_ref, mv_ref = _reference(x, gamma, beta, moving_mean, moving_var)
    np.testing.assert_allclose(np.asarray(y), np.asarray(y_ref), rtol=1e-4, atol=1e-4)
    np.testing.assert_allclose(np.asarray(new_mm), np.asarray(mm_ref), rtol=1e-5, atol=1e-5)
    np.testing.assert_allclose(np.asarray(new_mv), np.asarray(mv_ref), rtol=1e-5, atol=1e-5)

    # ---- 2D (NC) case: matches BatchNorm(num_features=32, num_dims=2) ----
    N2, C2 = 16, 32
    x2 = jax.random.normal(k2, (N2, C2), dtype=jnp.float32) * 1.5 - 0.3
    gamma2 = jnp.ones((1, C2), dtype=jnp.float32)
    beta2 = jnp.zeros((1, C2), dtype=jnp.float32)
    mm2 = jnp.zeros((1, C2), dtype=jnp.float32)
    mv2 = jnp.ones((1, C2), dtype=jnp.float32)

    y2, new_mm2, new_mv2 = batch_norm_pallas(x2, gamma2, beta2, mm2, mv2)
    jax.block_until_ready((y2, new_mm2, new_mv2))

    y2_ref, mm2_ref, mv2_ref = _reference(x2, gamma2, beta2, mm2, mv2)
    np.testing.assert_allclose(np.asarray(y2), np.asarray(y2_ref), rtol=1e-4, atol=1e-4)
    np.testing.assert_allclose(np.asarray(new_mm2), np.asarray(mm2_ref), rtol=1e-5, atol=1e-5)
    np.testing.assert_allclose(np.asarray(new_mv2), np.asarray(mv2_ref), rtol=1e-5, atol=1e-5)

    print("KERNEL_OK")
</pallas_src>

<mosaic_0001>
module attributes {stable_mosaic.version = 11 : i64} {
  func.func @_stats_kernel_3d(%arg0: i32, %arg1: i32, %arg2: memref<2x4x256xf32, #tpu.memory_space<vmem>>, %arg3: memref<1x4x1xf32, #tpu.memory_space<vmem>>, %arg4: memref<1x4x1xf32, #tpu.memory_space<vmem>>) attributes {dimension_semantics = [#tpu.dimension_semantics<arbitrary>, #tpu.dimension_semantics<arbitrary>], iteration_bounds = array<i64: 1, 1>, scalar_prefetch = 0 : i64, scratch_operands = 0 : i64, tpu.core_type = #tpu.core_type<tc>, window_params = [{transform_indices = @transform_0, window_bounds = array<i64: 2, 4, 256>}, {pipeline_mode = #tpu.pipeline_mode<synchronous>, transform_indices = @transform_1, window_bounds = array<i64: 1, 4, 1>}, {pipeline_mode = #tpu.pipeline_mode<synchronous>, transform_indices = @transform_2, window_bounds = array<i64: 1, 4, 1>}]} {
    %c0_i32 = arith.constant 0 : i32
    %0 = arith.cmpi eq, %arg0, %c0_i32 : i32
    %c0_i32_0 = arith.constant 0 : i32
    %1 = arith.cmpi eq, %arg1, %c0_i32_0 : i32
    %2 = arith.andi %0, %1 : i1
    %3 = arith.extui %2 : i1 to i32
    %c0_i32_1 = arith.constant 0 : i32
    %4 = arith.cmpi ne, %3, %c0_i32_1 : i32
    scf.if %4 {
      %cst_19 = arith.constant 0.000000e+00 : f32
      %21 = vector.broadcast %cst_19 : f32 to vector<1x4x1xf32>
      %c0_20 = arith.constant 0 : index
      %c0_21 = arith.constant 0 : index
      %c0_22 = arith.constant 0 : index
      %22 = vector.load %arg3[%c0_20, %c0_21, %c0_22] : memref<1x4x1xf32, #tpu.memory_space<vmem>>, vector<1x4x1xf32>
      tpu.vector_store %arg3[%c0_20, %c0_21, %c0_22], %21 {strides = array<i32>} : memref<1x4x1xf32, #tpu.memory_space<vmem>>, vector<1x4x1xf32>,
      %cst_23 = arith.constant 0.000000e+00 : f32
      %23 = vector.broadcast %cst_23 : f32 to vector<1x4x1xf32>
      %c0_24 = arith.constant 0 : index
      %c0_25 = arith.constant 0 : index
      %c0_26 = arith.constant 0 : index
      %24 = vector.load %arg4[%c0_24, %c0_25, %c0_26] : memref<1x4x1xf32, #tpu.memory_space<vmem>>, vector<1x4x1xf32>
      tpu.vector_store %arg4[%c0_24, %c0_25, %c0_26], %23 {strides = array<i32>} : memref<1x4x1xf32, #tpu.memory_space<vmem>>, vector<1x4x1xf32>,
    } else {
    }
    %c0 = arith.constant 0 : index
    %c0_2 = arith.constant 0 : index
    %c0_3 = arith.constant 0 : index
    %5 = vector.load %arg2[%c0, %c0_2, %c0_3] : memref<2x4x256xf32, #tpu.memory_space<vmem>>, vector<2x4x256xf32>
    %cst = arith.constant dense<0.000000e+00> : vector<2x4xf32>
    %6 = vector.multi_reduction <add>, %5, %cst [2] : vector<2x4x256xf32> to vector<2x4xf32>
    %7 = vector.shape_cast %6 : vector<2x4xf32> to vector<2x4x1xf32>
    %8 = arith.mulf %5, %5 : vector<2x4x256xf32>
    %cst_4 = arith.constant dense<0.000000e+00> : vector<2x4xf32>
    %9 = vector.multi_reduction <add>, %8, %cst_4 [2] : vector<2x4x256xf32> to vector<2x4xf32>
    %10 = vector.shape_cast %9 : vector<2x4xf32> to vector<2x4x1xf32>
    %c0_5 = arith.constant 0 : index
    %c0_6 = arith.constant 0 : index
    %c0_7 = arith.constant 0 : index
    %11 = vector.load %arg3[%c0_5, %c0_6, %c0_7] : memref<1x4x1xf32, #tpu.memory_space<vmem>>, vector<1x4x1xf32>
    %cst_8 = arith.constant dense<0.000000e+00> : vector<4x1xf32>
    %12 = vector.multi_reduction <add>, %7, %cst_8 [0] : vector<2x4x1xf32> to vector<4x1xf32>
    %13 = vector.shape_cast %12 : vector<4x1xf32> to vector<1x4x1xf32>
    %14 = arith.addf %11, %13 : vector<1x4x1xf32>
    %c0_9 = arith.constant 0 : index
    %c0_10 = arith.constant 0 : index
    %c0_11 = arith.constant 0 : index
    %15 = vector.load %arg3[%c0_9, %c0_10, %c0_11] : memref<1x4x1xf32, #tpu.memory_space<vmem>>, vector<1x4x1xf32>
    tpu.vector_store %arg3[%c0_9, %c0_10, %c0_11], %14 {strides = array<i32>} : memref<1x4x1xf32, #tpu.memory_space<vmem>>, vector<1x4x1xf32>,
    %c0_12 = arith.constant 0 : index
    %c0_13 = arith.constant 0 : index
    %c0_14 = arith.constant 0 : index
    %16 = vector.load %arg4[%c0_12, %c0_13, %c0_14] : memref<1x4x1xf32, #tpu.memory_space<vmem>>, vector<1x4x1xf32>
    %cst_15 = arith.constant dense<0.000000e+00> : vector<4x1xf32>
    %17 = vector.multi_reduction <add>, %10, %cst_15 [0] : vector<2x4x1xf32> to vector<4x1xf32>
    %18 = vector.shape_cast %17 : vector<4x1xf32> to vector<1x4x1xf32>
    %19 = arith.addf %16, %18 : vector<1x4x1xf32>
    %c0_16 = arith.constant 0 : index
    %c0_17 = arith.constant 0 : index
    %c0_18 = arith.constant 0 : index
    %20 = vector.load %arg4[%c0_16, %c0_17, %c0_18] : memref<1x4x1xf32, #tpu.memory_space<vmem>>, vector<1x4x1xf32>
    tpu.vector_store %arg4[%c0_16, %c0_17, %c0_18], %19 {strides = array<i32>} : memref<1x4x1xf32, #tpu.memory_space<vmem>>, vector<1x4x1xf32>,
    return
  }
  func.func @transform_0(%arg0: i32, %arg1: i32) -> (i32, i32, i32) {
    %c0_i32 = arith.constant 0 : i32
    %c0_i32_0 = arith.constant 0 : i32
    return %arg0, %c0_i32, %arg1 : i32, i32, i32
  }
  func.func @transform_1(%arg0: i32, %arg1: i32) -> (i32, i32, i32) {
    %c0_i32 = arith.constant 0 : i32
    %c0_i32_0 = arith.constant 0 : i32
    %c0_i32_1 = arith.constant 0 : i32
    %c0_i32_2 = arith.constant 0 : i32
    return %c0_i32, %c0_i32_0, %c0_i32_1 : i32, i32, i32
  }
  func.func @transform_2(%arg0: i32, %arg1: i32) -> (i32, i32, i32) {
    %c0_i32 = arith.constant 0 : i32
    %c0_i32_0 = arith.constant 0 : i32
    %c0_i32_1 = arith.constant 0 : i32
    %c0_i32_2 = arith.constant 0 : i32
    return %c0_i32, %c0_i32_0, %c0_i32_1 : i32, i32, i32
  }
}

</mosaic_0001>

<bundles_post_ra>
// kernel: tpu_custom_call.1
= control target key start
LH: loop header
LB: loop body
LE: loop exit
PB: predicated region body
PF: predicated region fallthrough
CT: control target
= control target key end

     0   :  { %8 = vsyncpa [#allocation3], 0  ;;  %s122_s9 = smov [#allocation2]   ;;  %s187_s0 = inlined_call_operand.hbm [shape: f32[2,4,256], index: 0, kind: input, shape index: {}]   ;;  %s188_s1 = inlined_call_operand.vmem [shape: f32[1,4,1], index: 1, kind: output, shape index: {0}]   ;;  %s189_s2 = inlined_call_operand.vmem [shape: f32[1,4,1], index: 2, kind: output, shape index: {1}]  }
   0x1   :  { %s14_s10 = sshll.u32 %s122_s9, 4  ;;  %s98_s13 = scalar_lea.hbm %s187_s0, 256  ;;  %s15_s10 = int_to_ptr.vmem [resolvable:$true] %s14_s10 }
   0x2   :  { %p99_p0 = scmp.ne.s32.totalorder %s187_s0, %s98_s13  ;;  %p102_p1 = scmp.lt.u32.totalorder %s98_s13, %s187_s0 }
   0x4   :  { %p104_p2 = pnand %p102_p1, %p99_p0 }
   0x6   :  { %107 = shalt.err (!%p104_p2)
}
   0x7   :  { %s108_s18 = scalar_lea.vmem %s15_s10, 256  ;;  %p113_p4 = scmp.lt.s32.totalorder %s15_s10, %s15_s10 }
   0x8   :  { %p109_p3 = scmp.ne.s32.totalorder %s15_s10, %s108_s18  ;;  %p114_p5 = scmp.lt.s32.totalorder %s108_s18, %s108_s18 }
   0xa   :  { %p115_p6 = por %p114_p5, %p113_p4 }
   0xc   :  { %p116_p7 = pnand %p115_p6, %p109_p3 }
   0xe   :  { %119 = shalt.err (!%p116_p7)
}
   0xf   :  { %s123_s19 = smov 128   ;;  %s124_s20 = smov 8  }
  0x10   :  { %20 = dma.hbm_to_vmem [thread:$0]  %s187_s0, 256, %s15_s10, [#allocation3], %s123_s19, %s123_s19, %s124_s20  }
  0x11   :  { %120 = dma.done.wait [#allocation3], 256  }
  0x12   :  { %121 = vsyncadd [#allocation3], 4294967040  ;;  %vm30_vm0 = vcmask 3072   ;;  %v125_v0 = vmov 0.0   ;;  %vm41_vm1 = vcmask 1043456   ;;  %v33_v1 = vld [vmem:[#allocation2] sm:$0xff] }
  0x13   :  { %31 = vst.msk [vmem:[%s188_s1] sm:$0xf] %vm30_vm0, %v125_v0  ;;  %32 = vst.msk [vmem:[%s189_s2] sm:$0xf] %vm30_vm0, %v125_v0  ;;  %v34_v2 = vld [vmem:[#allocation2 + $0x8] sm:$0xff]  ;;  %v37_v3 = vcombine.high %v33_v1, %v33_v1  ;;  %v42_v4 = vsel %vm41_vm1, %v33_v1, 0.0  ;;  %v52_v5 = vmul.f32 %v33_v1, %v33_v1 }
  0x14   :  { %v38_v6 = vcombine.high %v34_v2, %v34_v2  ;;  %v47_v7 = vsel %vm41_vm1, %v34_v2, 0.0  ;;  %v53_v8 = vmul.f32 %v34_v2, %v34_v2 }
  0x15   :  { %v43_v9 = vsel %vm41_vm1, %v37_v3, 0.0  ;;  %v56_v10 = vcombine.high %v52_v5, %v52_v5  ;;  %v60_v11 = vsel %vm41_vm1, %v52_v5, 0.0 }
  0x16   :  { %v48_v12 = vsel %vm41_vm1, %v38_v6, 0.0  ;;  %v44_v13 = vadd.f32 %v43_v9, %v42_v4  ;;  %v57_v14 = vcombine.high %v53_v8, %v53_v8  ;;  %v65_v16 = vsel %vm41_vm1, %v53_v8, 0.0 }
  0x17   :  { %v61_v15 = vsel %vm41_vm1, %v56_v10, 0.0  ;;  %v49_v18 = vadd.f32 %v48_v12, %v47_v7 }
  0x18   :  { %45 = vadd.xlane.f32.xlu0 %v44_v13  ;;  %v62_v17 = vadd.f32 %v61_v15, %v60_v11  ;;  %v66_v19 = vsel %vm41_vm1, %v57_v14, 0.0 }
  0x19   :  { %v67_v20 = vadd.f32 %v66_v19, %v65_v16 }
  0x1a   :  { %63 = vadd.xlane.f32.xlu1 %v62_v17  ;;  %v70_v25 = vld [vmem:[%s188_s1] sm:$0xf] }
  0x1b   :  { %v77_v30 = vld [vmem:[%s189_s2] sm:$0xf] }
  0x1c   :  { %50 = vadd.xlane.f32.xlu0 %v49_v18 }
  0x1e   :  { %68 = vadd.xlane.f32.xlu1 %v67_v20 }
  0xa5   :  { %v46_v21 = vpop.xlane.xlu0 %45 }
  0xa6   :  { %v71_v24 = vsel %vm41_vm1, %v46_v21, 0.0 }
  0xa7   :  { %v64_v22 = vpop.xlane.xlu1 %63 }
  0xa8   :  { %v78_v29 = vsel %vm41_vm1, %v64_v22, 0.0 }
  0xa9   :  { %v51_v23 = vpop.xlane.xlu0 %50 }
  0xaa   :  { %v72_v26 = vsel %vm41_vm1, %v51_v23, 0.0 }
  0xab   :  { %v73_v27 = vadd.f32 %v72_v26, %v71_v24  ;;  %v69_v28 = vpop.xlane.xlu1 %68 }
  0xac   :  { %v79_v31 = vsel %vm41_vm1, %v69_v28, 0.0 }
  0xad   :  { %v74_v32 = vadd.f32 %v73_v27, %v70_v25  ;;  %v80_v33 = vadd.f32 %v79_v31, %v78_v29 }
  0xaf   :  { %76 = vst.msk [vmem:[%s188_s1] sm:$0xf] %vm30_vm0, %v74_v32  ;;  %v81_v34 = vadd.f32 %v80_v33, %v77_v30 }
  0xb1   :  { %82 = vst.msk [vmem:[%s189_s2] sm:$0xf] %vm30_vm0, %v81_v34 }
  0xb2   :  { %91 = vsyncpa [#allocation3], 1 }

</bundles_post_ra>
